<compile_context>
chip_gen: v7x
topology: tpu7x:2x2x1
jax: 0.10.0
libtpu: 0.0.40
codegen_flags: <defaults>
</compile_context>

<pallas_src>
import functools

import jax
import jax.numpy as jnp
from jax.experimental import pallas as pl
from jax.experimental.pallas import tpu as pltpu

EPS = 1e-5
DEFAULT_TM = 512  # batch tile (rows); multiple of 8 sublanes, well under VMEM.


def _round_up(n, m):
    return ((n + m - 1) // m) * m


def mlp_kernel(x_ref,
               w1_ref, b1_ref,
               w2_ref, b2_ref,
               w3_ref, b3_ref,
               w4_ref, b4_ref,
               o_ref):
    x = x_ref[...]
    # fc1 + bn1 (folded) -> relu   (dropout = identity in eval mode)
    h = jnp.dot(x, w1_ref[...], preferred_element_type=jnp.float32) + b1_ref[...]
    h = jnp.maximum(h, 0.0)
    # fc2 + bn2 (folded) -> relu
    h = jnp.dot(h, w2_ref[...], preferred_element_type=jnp.float32) + b2_ref[...]
    h = jnp.maximum(h, 0.0)
    # fc3 + bn3 (folded) -> relu
    h = jnp.dot(h, w3_ref[...], preferred_element_type=jnp.float32) + b3_ref[...]
    h = jnp.maximum(h, 0.0)
    # fc4 (logits, lane-padded to a multiple of 128)
    o_ref[...] = (
        jnp.dot(h, w4_ref[...], preferred_element_type=jnp.float32) + b4_ref[...]
    ).astype(o_ref.dtype)


def _fold_bn(w, b, gamma, beta, mean, var):
    """Fold eval-mode BatchNorm into the preceding Linear (w: (in,out), rest (1,out))."""
    scale = gamma * jax.lax.rsqrt(var + EPS)
    return w * scale, (b - mean) * scale + beta


@functools.partial(jax.jit, static_argnames=("tm",))
def fully_connected_forward(x, params, tm=DEFAULT_TM):
    """x: (B, input_features) float32. params: flat list of 20 arrays (unfolded BN)."""
    (w1, b1, g1, be1, m1, v1,
     w2, b2, g2, be2, m2, v2,
     w3, b3, g3, be3, m3, v3,
     w4, b4) = params

    # Fold BN into the Linear layers (inference-only).
    w1f, b1f = _fold_bn(w1, b1, g1, be1, m1, v1)
    w2f, b2f = _fold_bn(w2, b2, g2, be2, m2, v2)
    w3f, b3f = _fold_bn(w3, b3, g3, be3, m3, v3)

    B, F = x.shape
    C = w4.shape[-1]

    # Lane-dense final output: pad C up to a multiple of 128 -> unmasked vst.
    C_pad = _round_up(C, 128)
    w4p = jnp.pad(w4, ((0, 0), (0, C_pad - C)))
    b4p = jnp.pad(b4, ((0, 0), (0, C_pad - C)))

    # Batch tile: at least 8 sublanes, at most `tm`; pad batch to a tile multiple.
    TM = min(tm, _round_up(B, 8))
    B_pad = _round_up(B, TM)
    x_p = jnp.pad(x, ((0, B_pad - B), (0, 0)))

    n_tiles = B_pad // TM
    weights = (w1f, b1f, w2f, b2f, w3f, b3f, w4p, b4p)

    # x / out are batch-tiled; weights & biases are full-block and VMEM-resident
    # (index_map constant across grid steps -> no re-DMA).
    x_spec = pl.BlockSpec((TM, F), lambda i: (i, 0))
    out_spec = pl.BlockSpec((TM, C_pad), lambda i: (i, 0))
    w_specs = [pl.BlockSpec(w.shape, lambda i: (0, 0)) for w in weights]

    h1, h2, h3 = w1.shape[1], w2.shape[1], w3.shape[1]
    flops = 2 * B_pad * (F * h1 + h1 * h2 + h2 * h3 + h3 * C_pad)
    bytes_accessed = 4 * (
        B_pad * F + B_pad * C_pad + sum(int(w.size) for w in weights)
    )

    out = pl.pallas_call(
        mlp_kernel,
        out_shape=jax.ShapeDtypeStruct((B_pad, C_pad), jnp.float32),
        grid=(n_tiles,),
        in_specs=[x_spec] + w_specs,
        out_specs=out_spec,
        compiler_params=pltpu.CompilerParams(
            dimension_semantics=("parallel",),
        ),
        cost_estimate=pl.CostEstimate(
            flops=flops, transcendentals=0, bytes_accessed=bytes_accessed
        ),
    )(x_p, *weights)

    return out[:B, :C]


def init_params(key, input_features, output_classes):
    """Deterministic parameter init matching the PyTorch module's shapes."""
    dims = [(input_features, 128), (128, 64), (64, 32), (32, output_classes)]
    params = []
    keys = jax.random.split(key, 16)
    ki = 0
    for li, (fan_in, fan_out) in enumerate(dims):
        bound = 1.0 / jnp.sqrt(fan_in)
        # PyTorch Linear weight is (out, in); store transposed as (in, out).
        w = jax.random.uniform(
            keys[ki], (fan_in, fan_out), jnp.float32, -bound, bound
        ); ki += 1
        b = jax.random.uniform(
            keys[ki], (1, fan_out), jnp.float32, -bound, bound
        ); ki += 1
        params += [w, b]
        if li < 3:  # BatchNorm1d after fc1, fc2, fc3
            gamma = jnp.ones((1, fan_out), jnp.float32)
            beta = jnp.zeros((1, fan_out), jnp.float32)
            # Non-trivial running stats so BN actually does something.
            mean = 0.1 * jax.random.normal(keys[ki], (1, fan_out), jnp.float32); ki += 1
            var = jnp.abs(
                1.0 + 0.1 * jax.random.normal(keys[ki], (1, fan_out), jnp.float32)
            ); ki += 1
            params += [gamma, beta, mean, var]
    return params


def reference_forward(x, params):
    """Plain-JAX reference (unfolded BN) for correctness checking."""
    (w1, b1, g1, be1, m1, v1,
     w2, b2, g2, be2, m2, v2,
     w3, b3, g3, be3, m3, v3,
     w4, b4) = params

    def bn_relu(h, g, be, m, v):
        return jnp.maximum((h - m) * jax.lax.rsqrt(v + EPS) * g + be, 0.0)

    h = bn_relu(x @ w1 + b1, g1, be1, m1, v1)
    h = bn_relu(h @ w2 + b2, g2, be2, m2, v2)
    h = bn_relu(h @ w3 + b3, g3, be3, m3, v3)
    return h @ w4 + b4


if __name__ == "__main__":
    B, F, C = 8, 16, 10  # batch, input_features, output_classes
    key = jax.random.PRNGKey(0)
    k_x, k_p = jax.random.split(key)
    x = jax.random.normal(k_x, (B, F), jnp.float32)
    params = init_params(k_p, F, C)

    out = fully_connected_forward(x, params)
    out = jax.block_until_ready(out)

    ref = reference_forward(x, params)
    assert out.shape == (B, C)
    assert jnp.allclose(out, ref, atol=1e-4, rtol=1e-4), "mismatch vs reference"
    print("KERNEL_OK")
</pallas_src>

<mosaic_0001>
module attributes {stable_mosaic.version = 11 : i64} {
  func.func @mlp_kernel(%arg0: i32, %arg1: memref<8x16xf32, #tpu.memory_space<vmem>>, %arg2: memref<16x128xf32, #tpu.memory_space<vmem>>, %arg3: memref<1x128xf32, #tpu.memory_space<vmem>>, %arg4: memref<128x64xf32, #tpu.memory_space<vmem>>, %arg5: memref<1x64xf32, #tpu.memory_space<vmem>>, %arg6: memref<64x32xf32, #tpu.memory_space<vmem>>, %arg7: memref<1x32xf32, #tpu.memory_space<vmem>>, %arg8: memref<32x128xf32, #tpu.memory_space<vmem>>, %arg9: memref<1x128xf32, #tpu.memory_space<vmem>>, %arg10: memref<8x128xf32, #tpu.memory_space<vmem>>) attributes {dimension_semantics = [#tpu.dimension_semantics<parallel>], iteration_bounds = array<i64: 1>, scalar_prefetch = 0 : i64, scratch_operands = 0 : i64, tpu.core_type = #tpu.core_type<tc>, window_params = [{transform_indices = @transform_0, window_bounds = array<i64: 8, 16>}, {pipeline_mode = #tpu.pipeline_mode<synchronous>, transform_indices = @transform_1, window_bounds = array<i64: 16, 128>}, {pipeline_mode = #tpu.pipeline_mode<synchronous>, transform_indices = @transform_2, window_bounds = array<i64: 1, 128>}, {pipeline_mode = #tpu.pipeline_mode<synchronous>, transform_indices = @transform_3, window_bounds = array<i64: 128, 64>}, {pipeline_mode = #tpu.pipeline_mode<synchronous>, transform_indices = @transform_4, window_bounds = array<i64: 1, 64>}, {pipeline_mode = #tpu.pipeline_mode<synchronous>, transform_indices = @transform_5, window_bounds = array<i64: 64, 32>}, {pipeline_mode = #tpu.pipeline_mode<synchronous>, transform_indices = @transform_6, window_bounds = array<i64: 1, 32>}, {pipeline_mode = #tpu.pipeline_mode<synchronous>, transform_indices = @transform_7, window_bounds = array<i64: 32, 128>}, {pipeline_mode = #tpu.pipeline_mode<synchronous>, transform_indices = @transform_8, window_bounds = array<i64: 1, 128>}, {transform_indices = @transform_9, window_bounds = array<i64: 8, 128>}]} {
    %c0 = arith.constant 0 : index
    %c0_0 = arith.constant 0 : index
    %0 = vector.load %arg1[%c0, %c0_0] : memref<8x16xf32, #tpu.memory_space<vmem>>, vector<8x16xf32>
    %c0_1 = arith.constant 0 : index
    %c0_2 = arith.constant 0 : index
    %1 = vector.load %arg2[%c0_1, %c0_2] : memref<16x128xf32, #tpu.memory_space<vmem>>, vector<16x128xf32>
    %cst = arith.constant dense<0.000000e+00> : vector<8x128xf32>
    %2 = tpu.matmul %0, %1, %cst {dimension_numbers = #tpu.dot_dimension_numbers<[1], [0], [0], [1], [0, 0, 1, 1], [], []>} : vector<8x16xf32>, vector<16x128xf32>, vector<8x128xf32> -> vector<8x128xf32>
    %c0_3 = arith.constant 0 : index
    %c0_4 = arith.constant 0 : index
    %3 = vector.load %arg3[%c0_3, %c0_4] : memref<1x128xf32, #tpu.memory_space<vmem>>, vector<1x128xf32>
    %4 = vector.broadcast %3 : vector<1x128xf32> to vector<8x128xf32>
    %5 = arith.addf %2, %4 : vector<8x128xf32>
    %cst_5 = arith.constant 0.000000e+00 : f32
    %6 = vector.broadcast %cst_5 : f32 to vector<8x128xf32>
    %7 = arith.maximumf %5, %6 : vector<8x128xf32>
    %c0_6 = arith.constant 0 : index
    %c0_7 = arith.constant 0 : index
    %8 = vector.load %arg4[%c0_6, %c0_7] : memref<128x64xf32, #tpu.memory_space<vmem>>, vector<128x64xf32>
    %cst_8 = arith.constant dense<0.000000e+00> : vector<8x64xf32>
    %9 = tpu.matmul %7, %8, %cst_8 {dimension_numbers = #tpu.dot_dimension_numbers<[1], [0], [0], [1], [0, 0, 1, 1], [], []>} : vector<8x128xf32>, vector<128x64xf32>, vector<8x64xf32> -> vector<8x64xf32>
    %c0_9 = arith.constant 0 : index
    %c0_10 = arith.constant 0 : index
    %10 = vector.load %arg5[%c0_9, %c0_10] : memref<1x64xf32, #tpu.memory_space<vmem>>, vector<1x64xf32>
    %11 = vector.broadcast %10 : vector<1x64xf32> to vector<8x64xf32>
    %12 = arith.addf %9, %11 : vector<8x64xf32>
    %cst_11 = arith.constant 0.000000e+00 : f32
    %13 = vector.broadcast %cst_11 : f32 to vector<8x64xf32>
    %14 = arith.maximumf %12, %13 : vector<8x64xf32>
    %c0_12 = arith.constant 0 : index
    %c0_13 = arith.constant 0 : index
    %15 = vector.load %arg6[%c0_12, %c0_13] : memref<64x32xf32, #tpu.memory_space<vmem>>, vector<64x32xf32>
    %cst_14 = arith.constant dense<0.000000e+00> : vector<8x32xf32>
    %16 = tpu.matmul %14, %15, %cst_14 {dimension_numbers = #tpu.dot_dimension_numbers<[1], [0], [0], [1], [0, 0, 1, 1], [], []>} : vector<8x64xf32>, vector<64x32xf32>, vector<8x32xf32> -> vector<8x32xf32>
    %c0_15 = arith.constant 0 : index
    %c0_16 = arith.constant 0 : index
    %17 = vector.load %arg7[%c0_15, %c0_16] : memref<1x32xf32, #tpu.memory_space<vmem>>, vector<1x32xf32>
    %18 = vector.broadcast %17 : vector<1x32xf32> to vector<8x32xf32>
    %19 = arith.addf %16, %18 : vector<8x32xf32>
    %cst_17 = arith.constant 0.000000e+00 : f32
    %20 = vector.broadcast %cst_17 : f32 to vector<8x32xf32>
    %21 = arith.maximumf %19, %20 : vector<8x32xf32>
    %c0_18 = arith.constant 0 : index
    %c0_19 = arith.constant 0 : index
    %22 = vector.load %arg8[%c0_18, %c0_19] : memref<32x128xf32, #tpu.memory_space<vmem>>, vector<32x128xf32>
    %cst_20 = arith.constant dense<0.000000e+00> : vector<8x128xf32>
    %23 = tpu.matmul %21, %22, %cst_20 {dimension_numbers = #tpu.dot_dimension_numbers<[1], [0], [0], [1], [0, 0, 1, 1], [], []>} : vector<8x32xf32>, vector<32x128xf32>, vector<8x128xf32> -> vector<8x128xf32>
    %c0_21 = arith.constant 0 : index
    %c0_22 = arith.constant 0 : index
    %24 = vector.load %arg9[%c0_21, %c0_22] : memref<1x128xf32, #tpu.memory_space<vmem>>, vector<1x128xf32>
    %25 = vector.broadcast %24 : vector<1x128xf32> to vector<8x128xf32>
    %26 = arith.addf %23, %25 : vector<8x128xf32>
    %c0_23 = arith.constant 0 : index
    %c0_24 = arith.constant 0 : index
    %27 = vector.load %arg10[%c0_23, %c0_24] : memref<8x128xf32, #tpu.memory_space<vmem>>, vector<8x128xf32>
    tpu.vector_store %arg10[%c0_23, %c0_24], %26 {strides = array<i32>} : memref<8x128xf32, #tpu.memory_space<vmem>>, vector<8x128xf32>,
    return
  }
  func.func @transform_0(%arg0: i32) -> (i32, i32) {
    %c0_i32 = arith.constant 0 : i32
    %c0_i32_0 = arith.constant 0 : i32
    return %arg0, %c0_i32 : i32, i32
  }
  func.func @transform_1(%arg0: i32) -> (i32, i32) {
    %c0_i32 = arith.constant 0 : i32
    %c0_i32_0 = arith.constant 0 : i32
    %c0_i32_1 = arith.constant 0 : i32
    return %c0_i32, %c0_i32_0 : i32, i32
  }
  func.func @transform_2(%arg0: i32) -> (i32, i32) {
    %c0_i32 = arith.constant 0 : i32
    %c0_i32_0 = arith.constant 0 : i32
    %c0_i32_1 = arith.constant 0 : i32
    return %c0_i32, %c0_i32_0 : i32, i32
  }
  func.func @transform_3(%arg0: i32) -> (i32, i32) {
    %c0_i32 = arith.constant 0 : i32
    %c0_i32_0 = arith.constant 0 : i32
    %c0_i32_1 = arith.constant 0 : i32
    return %c0_i32, %c0_i32_0 : i32, i32
  }
  func.func @transform_4(%arg0: i32) -> (i32, i32) {
    %c0_i32 = arith.constant 0 : i32
    %c0_i32_0 = arith.constant 0 : i32
    %c0_i32_1 = arith.constant 0 : i32
    return %c0_i32, %c0_i32_0 : i32, i32
  }
  func.func @transform_5(%arg0: i32) -> (i32, i32) {
    %c0_i32 = arith.constant 0 : i32
    %c0_i32_0 = arith.constant 0 : i32
    %c0_i32_1 = arith.constant 0 : i32
    return %c0_i32, %c0_i32_0 : i32, i32
  }
  func.func @transform_6(%arg0: i32) -> (i32, i32) {
    %c0_i32 = arith.constant 0 : i32
    %c0_i32_0 = arith.constant 0 : i32
    %c0_i32_1 = arith.constant 0 : i32
    return %c0_i32, %c0_i32_0 : i32, i32
  }
  func.func @transform_7(%arg0: i32) -> (i32, i32) {
    %c0_i32 = arith.constant 0 : i32
    %c0_i32_0 = arith.constant 0 : i32
    %c0_i32_1 = arith.constant 0 : i32
    return %c0_i32, %c0_i32_0 : i32, i32
  }
  func.func @transform_8(%arg0: i32) -> (i32, i32) {
    %c0_i32 = arith.constant 0 : i32
    %c0_i32_0 = arith.constant 0 : i32
    %c0_i32_1 = arith.constant 0 : i32
    return %c0_i32, %c0_i32_0 : i32, i32
  }
  func.func @transform_9(%arg0: i32) -> (i32, i32) {
    %c0_i32 = arith.constant 0 : i32
    %c0_i32_0 = arith.constant 0 : i32
    return %arg0, %c0_i32 : i32, i32
  }
}

</mosaic_0001>

<bundles_post_ra>
// kernel: fully_connected_forward.1
= control target key start
LH: loop header
LB: loop body
LE: loop exit
PB: predicated region body
PF: predicated region fallthrough
CT: control target
= control target key end

     0   :  { %v588_v2 = vmov 0.0|0.0   ;;  %vm589_vm0 = vmmov 0   ;;  %v590_v4 = vmov 0.0   ;;  %vm43_vm1 = vcmask 130048   ;;  %s782_s0 = inlined_call_operand.vmem [shape: f32[8,16], index: 0, kind: input, shape index: {}]   ;;  %s783_s1 = inlined_call_operand.vmem [shape: f32[16,128], index: 1, kind: input, shape index: {}]   ;;  %s784_s2 = inlined_call_operand.vmem [shape: f32[1,128], index: 2, kind: input, shape index: {}]   ;;  %s785_s3 = inlined_call_operand.vmem [shape: f32[128,64], index: 3, kind: input, shape index: {}]   ;;  %s786_s4 = inlined_call_operand.vmem [shape: f32[1,64], index: 4, kind: input, shape index: {}]   ;;  %s787_s5 = inlined_call_operand.vmem [shape: f32[64,32], index: 5, kind: input, shape index: {}]   ;;  %s788_s6 = inlined_call_operand.vmem [shape: f32[1,32], index: 6, kind: input, shape index: {}]   ;;  %s789_s7 = inlined_call_operand.vmem [shape: f32[32,128], index: 7, kind: input, shape index: {}]   ;;  %s790_s8 = inlined_call_operand.vmem [shape: f32[1,128], index: 8, kind: input, shape index: {}]   ;;  %s791_s9 = inlined_call_operand.hbm [shape: f32[8,128], index: 9, kind: output, shape index: {}]  }
   0x1   :  { %v34_v0 = vld [vmem:[%s783_s1] sm:$0xff]  ;;  %v35_v1 = vld [vmem:[%s783_s1 + $0x8] sm:$0xff]  ;;  %515 = vmatprep.subr.bf16.mxu0 %v588_v2  ;;  %447 = vmatprep.mubr.msk.f32.mxu0 %vm589_vm0, %v590_v4  ;;  %v120_v7 = vld [vmem:[%s785_s3 + $0x10] sm:$0xff] }
   0x2   :  { %v516_v3 = vpack.c.bf16 %v35_v1, %v34_v0  ;;  %v118_v5 = vld [vmem:[%s785_s3] sm:$0xff]  ;;  %v119_v6 = vld [vmem:[%s785_s3 + $0x8] sm:$0xff]  ;;  %518 = vmatprep.subr.bf16.mxu1 %v588_v2  ;;  %v121_v9 = vld [vmem:[%s785_s3 + $0x18] sm:$0xff]  ;;  %482 = vmatprep.mubr.msk.f32.mxu1 %vm589_vm0, %v590_v4 }
   0x3   :  { %v519_v8 = vpack.c.bf16 %v119_v6, %v118_v5  ;;  %v33_v10 = vld [vmem:[%s782_s0] sm:$0xff]  ;;  %v522_v11 = vpack.c.bf16 %v121_v9, %v120_v7  ;;  %v123_v13 = vld [vmem:[%s785_s3 + $0x28] sm:$0xff] }
   0x4   :  { %517 = vmatpush3.bf16.msra.mxu0 %v516_v3  ;;  %v122_v12 = vld [vmem:[%s785_s3 + $0x20] sm:$0xff] }
   0x5   :  { %520 = vmatpush3.bf16.msra.mxu1 %v519_v8  ;;  %542 = vmatprep.subr.bf16.mxu0 %v588_v2 }
   0x6   :  { %521 = vmatprep.subr.bf16.mxu1 %v588_v2 }
   0x7   :  { %448 = vmatmul.mubr.msk.f32.vlgmr.msra.gmra.mrb[0].mxu0 %vm43_vm1, %v33_v10 }
   0x8   :  { %14 = vsyncpa [#allocation3], 0  ;;  %501 = vmatprep.mubr.msk.f32.mxu0 %vm589_vm0, %v590_v4  ;;  %v525_v14 = vpack.c.bf16 %v123_v13, %v122_v12  ;;  %v124_v15 = vld [vmem:[%s785_s3 + $0x30] sm:$0xff]  ;;  %v125_v16 = vld [vmem:[%s785_s3 + $0x38] sm:$0xff]  ;;  %vm227_vm2 = vcmask 523264   ;;  %vm313_vm3 = vcmask 261120  }
   0x9   :  { %523 = vmatpush3.bf16.msra.mxu1 %v522_v11  ;;  %v528_v17 = vpack.c.bf16 %v125_v16, %v124_v15  ;;  %v126_v18 = vld [vmem:[%s785_s3 + $0x40] sm:$0xff]  ;;  %v127_v19 = vld [vmem:[%s785_s3 + $0x48] sm:$0xff]  ;;  %v128_v21 = vld [vmem:[%s785_s3 + $0x50] sm:$0xff]  ;;  %s591_s27 = smov [#allocation2]  }
   0xa   :  { %524 = vmatprep.subr.bf16.mxu1 %v588_v2  ;;  %v531_v20 = vpack.c.bf16 %v127_v19, %v126_v18  ;;  %v129_v22 = vld [vmem:[%s785_s3 + $0x58] sm:$0xff]  ;;  %v130_v24 = vld [vmem:[%s785_s3 + $0x60] sm:$0xff]  ;;  %v131_v25 = vld [vmem:[%s785_s3 + $0x68] sm:$0xff]  ;;  %s394_s28 = sshll.u32 %s591_s27, 4  ;;  %s395_s28 = int_to_ptr.vmem [resolvable:$true] %s394_s28 }
   0xb   :  { %v534_v23 = vpack.c.bf16 %v129_v22, %v128_v21  ;;  %v537_v26 = vpack.c.bf16 %v131_v25, %v130_v24  ;;  %v132_v27 = vld [vmem:[%s785_s3 + $0x70] sm:$0xff]  ;;  %v133_v28 = vld [vmem:[%s785_s3 + $0x78] sm:$0xff]  ;;  %v212_v30 = vld [vmem:[%s787_s5] sm:$0xff]  ;;  %p569_p1 = scmp.lt.s32.totalorder %s395_s28, %s395_s28 }
   0xc   :  { %v540_v29 = vpack.c.bf16 %v133_v28, %v132_v27  ;;  %v213_v31 = vld [vmem:[%s787_s5 + $0x8] sm:$0xff]  ;;  %v214_v32 = vld [vmem:[%s787_s5 + $0x10] sm:$0xff]  ;;  %v215_v34 = vld [vmem:[%s787_s5 + $0x18] sm:$0xff] }
   0xd   :  { %526 = vmatpush3.bf16.msra.mxu1 %v525_v14  ;;  %v543_v33 = vpack.c.bf16 %v213_v31, %v212_v30  ;;  %v546_v35 = vpack.c.bf16 %v215_v34, %v214_v32  ;;  %v216_v36 = vld [vmem:[%s787_s5 + $0x20] sm:$0xff]  ;;  %v217_v37 = vld [vmem:[%s787_s5 + $0x28] sm:$0xff]  ;;  %v218_v44 = vld [vmem:[%s787_s5 + $0x30] sm:$0xff] }
   0xe   :  { %527 = vmatprep.subr.bf16.mxu1 %v588_v2  ;;  %v549_v38 = vpack.c.bf16 %v217_v37, %v216_v36  ;;  %v402_v39 = vld [vmem:[%s784_s2] ss:$0 sm:$0xff]  ;;  %v219_v45 = vld [vmem:[%s787_s5 + $0x38] sm:$0xff]  ;;  %v303_v49 = vld [vmem:[%s789_s7 + $0x8] sm:$0xff] }
   0xf   :  { %544 = vmatpush3.bf16.msra.mxu0 %v543_v33  ;;  %v552_v46 = vpack.c.bf16 %v219_v45, %v218_v44  ;;  %v404_v47 = vld [vmem:[%s786_s4] ss:$0 sm:$0xff]  ;;  %v304_v55 = vld [vmem:[%s789_s7 + $0x10] sm:$0xff]  ;;  %v305_v56 = vld [vmem:[%s789_s7 + $0x18] sm:$0xff] }
  0x10   :  { %545 = vmatprep.subr.bf16.mxu0 %v588_v2  ;;  %v302_v48 = vld [vmem:[%s789_s7] sm:$0xff]  ;;  %v558_v57 = vpack.c.bf16 %v305_v56, %v304_v55  ;;  %s564_s7 = scalar_lea.vmem %s395_s28, 128 }
  0x11   :  { %529 = vmatpush3.bf16.msra.mxu1 %v528_v17  ;;  %v555_v53 = vpack.c.bf16 %v303_v49, %v302_v48  ;;  %v405_v58 = vld [vmem:[%s788_s6] ss:$0 sm:$0xff]  ;;  %p565_p0 = scmp.ne.s32.totalorder %s395_s28, %s564_s7  ;;  %p570_p2 = scmp.lt.s32.totalorder %s564_s7, %s564_s7 }
  0x12   :  { %530 = vmatprep.subr.bf16.mxu1 %v588_v2  ;;  %v407_v63 = vld [vmem:[%s790_s8] ss:$0 sm:$0xff] }
  0x13   :  { %547 = vmatpush3.bf16.msra.mxu0 %v546_v35  ;;  %p571_p3 = por %p570_p2, %p569_p1 }
  0x14   :  { %548 = vmatprep.subr.bf16.mxu0 %v588_v2 }
  0x15   :  { %532 = vmatpush3.bf16.msra.mxu1 %v531_v20  ;;  %p572_p4 = pnand %p571_p3, %p565_p0 }
  0x16   :  { %533 = vmatprep.subr.bf16.mxu1 %v588_v2 }
  0x17   :  { %550 = vmatpush3.bf16.msra.mxu0 %v549_v38 }
  0x18   :  { %551 = vmatprep.subr.bf16.mxu0 %v588_v2 }
  0x19   :  { %535 = vmatpush3.bf16.msra.mxu1 %v534_v23 }
  0x1a   :  { %536 = vmatprep.subr.bf16.mxu1 %v588_v2 }
  0x1b   :  { %553 = vmatpush3.bf16.msra.mxu0 %v552_v46 }
  0x1c   :  { %554 = vmatprep.subr.bf16.mxu0 %v588_v2 }
  0x1d   :  { %538 = vmatpush3.bf16.msra.mxu1 %v537_v26 }
  0x1e   :  { %539 = vmatprep.subr.bf16.mxu1 %v588_v2 }
  0x21   :  { %541 = vmatpush3.bf16.msra.mxu1 %v540_v29 }
  0xda   :  { %v113_v40 = vpop.f32.mrb[0].mxu0 }
  0xdb   :  { %v114_v41 = vadd.f32 %v402_v39, %v113_v40  ;;  %v449_v42 = vpop.f32.mrb[1].mxu0 }
  0xdd   :  { %v117_v43 = vmax.f32 %v114_v41, 0.0 }
  0xdf   :  { %483 = vmatmul.mubr.f32.vlgmr.msra.gmra.mrb[0].mxu1 %v117_v43 }
 0x1b2   :  { %v207_v50 = vpop.f32.mrb[0].mxu1 }
 0x1b3   :  { %v208_v51 = vadd.f32 %v404_v47, %v207_v50  ;;  %v484_v52 = vpop.f32.mrb[1].mxu1 }
 0x1b5   :  { %v211_v54 = vmax.f32 %v208_v51, 0.0 }
 0x1b7   :  { %502 = vmatmul.mubr.msk.f32.vlgmr.msra.gmra.mrb[2].mxu0 %vm227_vm2, %v211_v54 }
 0x1b8   :  { %556 = vmatpush3.bf16.msra.mxu0 %v555_v53  ;;  %512 = vmatprep.mubr.msk.f32.mxu0 %vm589_vm0, %v590_v4 }
 0x1b9   :  { %557 = vmatprep.subr.bf16.mxu0 %v588_v2 }
 0x1bc   :  { %559 = vmatpush3.bf16.msra.mxu0 %v558_v57 }
 0x28a   :  { %v297_v59 = vpop.f32.mrb[2].mxu0 }
 0x28b   :  { %v298_v60 = vadd.f32 %v405_v58, %v297_v59  ;;  %v503_v61 = vpop.f32.mrb[3].mxu0 }
 0x28d   :  { %v301_v62 = vmax.f32 %v298_v60, 0.0 }
 0x28f   :  { %513 = vmatmul.mubr.msk.f32.vlgmr.msra.gmra.mrb[4].mxu0 %vm313_vm3, %v301_v62 }
 0x362   :  { %v383_v0 = vpop.f32.mrb[4].mxu0 }
 0x363   :  { %v384_v1 = vadd.f32 %v407_v63, %v383_v0  ;;  %v514_v2 = vpop.f32.mrb[5].mxu0 }
 0x365   :  { %387 = vst [vmem:[#allocation2] sm:$0xff] %v384_v1 }
 0x366   :  { %575 = shalt.err (!%p572_p4)
}
 0x367   :  { %s576_s3 = scalar_lea.hbm %s791_s9, 128 }
 0x368   :  { %p577_p5 = scmp.ne.s32.totalorder %s791_s9, %s576_s3  ;;  %p580_p6 = scmp.lt.u32.totalorder %s576_s3, %s791_s9 }
 0x36a   :  { %p582_p7 = pnand %p580_p6, %p577_p5 }
 0x36c   :  { %585 = shalt.err (!%p582_p7)
}
 0x36d   :  { %397 = dma.vmem_to_hbm [thread:$0]  %s395_s28, 128, %s791_s9, [#allocation3]  }
 0x36e   :  { %586 = dma.done.wait [#allocation3], 128  }
 0x36f   :  { %587 = vsyncadd [#allocation3], 4294967168 }
 0x370   :  { %401 = vsyncpa [#allocation3], 1 }

</bundles_post_ra>
